<compile_context>
chip_gen: v6e
topology: v6e:2x2x1
jax: 0.10.0
libtpu: 0.0.40
codegen_flags: <defaults>
</compile_context>

<pallas_src>
import functools
import math

import jax
import jax.numpy as jnp
from jax.experimental import pallas as pl
from jax.experimental.pallas import tpu as pltpu


# ----------------------------------------------------------------------------
# Helpers
# ----------------------------------------------------------------------------
def _round_up(x, m):
    return ((x + m - 1) // m) * m


def _sublane(dtype):
    return {4: 8, 2: 16, 1: 32}[jnp.dtype(dtype).itemsize]


def _vmem_capacity_bytes():
    try:
        return int(pltpu.get_tpu_info().vmem_capacity_bytes)
    except Exception:
        return 64 << 20  # conservative fallback (v7x-sized)


def _choose_row_tile(batch, per_row_bytes, resident_bytes, budget, sub, tm):
    """Pick the batch tile from the VMEM budget; prefer an even step count."""
    if tm is None:
        tm = (budget - resident_bytes) // max(per_row_bytes, 1)
        tm = max(sub, min(int(tm), 1024))
    if tm >= batch:
        return batch                      # single full block
    tm = max(sub, (tm // sub) * sub)
    steps = pl.cdiv(batch, tm)
    # v7x shards the parallel grid axis across 2 TensorCores -> even steps.
    if steps > 1 and steps % 2 == 1:
        tm_even = max(sub, _round_up(pl.cdiv(batch, steps + 1), sub))
        if tm_even < batch:
            tm = tm_even
    return tm


# ----------------------------------------------------------------------------
# Kernels
# ----------------------------------------------------------------------------
def siren_kernel(x_ref, wt_ref, b_ref, o_ref, *, compute_dtype):
    # x_ref : (TM, K)   natural dtype (cast to compute dtype here, in-kernel)
    # wt_ref: (K, TN)   compute dtype, = (w0*W)^T, zero padded on N
    # b_ref : (1, TN)   f32, = w0*b, zero padded
    # o_ref : (TM, TN)
    x = x_ref[...]
    if jnp.dtype(x.dtype) != jnp.dtype(compute_dtype):
        x = x.astype(compute_dtype)
    acc = jnp.dot(x, wt_ref[...], preferred_element_type=jnp.float32)
    acc = acc + b_ref[...]                         # f32 bias add
    o_ref[...] = jnp.sin(acc).astype(o_ref.dtype)  # sine in f32


def _make_fused_siren_kernel(num_layers, compute_dtype):
    """Fused stack of Siren layers; activations stay on-chip between layers."""
    def kernel(*refs):
        x_ref = refs[0]
        o_ref = refs[-1]
        h = x_ref[...]
        if jnp.dtype(h.dtype) != jnp.dtype(compute_dtype):
            h = h.astype(compute_dtype)
        for l in range(num_layers):
            wt_ref = refs[1 + 2 * l]
            b_ref = refs[2 + 2 * l]
            acc = jnp.dot(h, wt_ref[...], preferred_element_type=jnp.float32)
            acc = acc + b_ref[...]
            h = jnp.sin(acc)
            if l + 1 < num_layers:
                h = h.astype(compute_dtype)        # next layer's MXU input
        o_ref[...] = h.astype(o_ref.dtype)
    return kernel


# ----------------------------------------------------------------------------
# Parameter preparation (one-time; do NOT redo per forward call)
# ----------------------------------------------------------------------------
def prepare_siren_params(weight, bias, w0=30.0, compute_dtype=jnp.bfloat16,
                         pad_in=False):
    """Fold w0, transpose, pad dim_out to a lane multiple, cast -- done once.

    weight: (dim_out, dim_in), bias: (dim_out,) or None.
    Returns (wt, b): (K, dim_out_p) compute dtype and (1, dim_out_p) f32,
    with dim_out_p rounded up to 128.  K == dim_in unless pad_in=True (used
    for fused stacks, where K must match the previous layer's padded width).
    """
    dim_out, dim_in = weight.shape
    dim_in_p = _round_up(dim_in, 128) if pad_in else dim_in
    dim_out_p = _round_up(dim_out, 128)

    wt = (w0 * weight.astype(jnp.float32)).T                      # (dim_in, dim_out)
    wt = jnp.pad(wt, ((0, dim_in_p - dim_in), (0, dim_out_p - dim_out)))
    wt = wt.astype(compute_dtype)

    if bias is None:
        b2 = jnp.zeros((1, dim_out_p), jnp.float32)
    else:
        b2 = (w0 * bias.astype(jnp.float32)).reshape(1, dim_out)
        b2 = jnp.pad(b2, ((0, 0), (0, dim_out_p - dim_out)))
    return wt, b2


def prepare_siren_mlp_params(weights_and_biases, w0=30.0,
                             compute_dtype=jnp.bfloat16):
    """weights_and_biases: list of (weight, bias) for a stacked Siren MLP."""
    prepared = []
    for l, (w, b) in enumerate(weights_and_biases):
        prepared.append(prepare_siren_params(
            w, b, w0=w0, compute_dtype=compute_dtype, pad_in=(l > 0)))
    return prepared


# ----------------------------------------------------------------------------
# Single-layer forward (matches the PyTorch `Siren` module)
# ----------------------------------------------------------------------------
def siren_forward(x, wt_padded, b_padded, dim_out, *, out_dtype=None,
                  tm=None, tn=None):
    """x: (..., dim_in); wt_padded/b_padded from prepare_siren_params()."""
    lead = x.shape[:-1]
    dim_in = x.shape[-1]
    x2 = x.reshape(-1, dim_in)
    batch = x2.shape[0]

    K, N_p = wt_padded.shape
    assert K == dim_in, "use prepare_siren_params(pad_in=False) for single layer"
    compute_dtype = wt_padded.dtype
    out_dtype = x.dtype if out_dtype is None else out_dtype

    x_sz = jnp.dtype(x2.dtype).itemsize
    w_sz = jnp.dtype(compute_dtype).itemsize
    o_sz = jnp.dtype(out_dtype).itemsize
    sub = max(_sublane(x2.dtype), _sublane(out_dtype))

    cap = _vmem_capacity_bytes()
    budget = max(16 << 20, cap // 2 - (4 << 20))

    # Tile N only if the (double-buffered) weight block would blow the budget.
    if tn is None:
        tn = N_p
        while tn > 128 and 2 * (K * tn * w_sz + tn * 4) > budget // 2:
            tn = max(128, _round_up(tn // 2, 128))
    resident = 2 * (K * tn * w_sz + tn * 4)        # weight+bias (double-buffered)
    per_row = 2 * (K * x_sz + tn * o_sz)           # double-buffered x + out rows
    tm = _choose_row_tile(batch, per_row, resident, budget, sub, tm)

    grid = (pl.cdiv(batch, tm), pl.cdiv(N_p, tn))

    vmem_need = resident + tm * per_row + tm * tn * 4 + (2 << 20)
    vmem_limit = int(min(cap, max(32 << 20, int(1.4 * vmem_need))))

    out = pl.pallas_call(
        functools.partial(siren_kernel, compute_dtype=compute_dtype),
        out_shape=jax.ShapeDtypeStruct((batch, N_p), out_dtype),
        grid_spec=pltpu.PrefetchScalarGridSpec(
            num_scalar_prefetch=0,
            grid=grid,
            in_specs=[
                pl.BlockSpec((tm, K), lambda i, j: (i, 0)),
                # constant over i -> weight/bias stay resident across the batch axis
                pl.BlockSpec((K, tn), lambda i, j: (0, j)),
                pl.BlockSpec((1, tn), lambda i, j: (0, j)),
            ],
            out_specs=pl.BlockSpec((tm, tn), lambda i, j: (i, j)),
        ),
        compiler_params=pltpu.CompilerParams(
            dimension_semantics=("parallel", "parallel"),
            vmem_limit_bytes=vmem_limit,
        ),
    )(x2, wt_padded, b_padded)

    if N_p != dim_out:
        out = out[:, :dim_out]   # free view when dim_out is a 128-multiple
    return out.reshape(*lead, dim_out)


# ----------------------------------------------------------------------------
# Fused multi-layer forward (stack of Siren modules in one pallas_call)
# ----------------------------------------------------------------------------
def siren_mlp_forward(x, prepared, dim_out, *, out_dtype=None, tm=None):
    """prepared = prepare_siren_mlp_params(...); all weights resident in VMEM."""
    lead = x.shape[:-1]
    dim_in = x.shape[-1]
    x2 = x.reshape(-1, dim_in)
    batch = x2.shape[0]
    num_layers = len(prepared)

    assert prepared[0][0].shape[0] == dim_in
    for l in range(1, num_layers):
        assert prepared[l][0].shape[0] == prepared[l - 1][0].shape[1], \
            "padded layer widths must chain (dim_out[l-1] == dim_in[l])"

    compute_dtype = prepared[0][0].dtype
    out_dtype = x.dtype if out_dtype is None else out_dtype
    N_out_p = prepared[-1][0].shape[1]
    max_w = max(wt.shape[1] for wt, _ in prepared)

    x_sz = jnp.dtype(x2.dtype).itemsize
    o_sz = jnp.dtype(out_dtype).itemsize
    sub = max(_sublane(x2.dtype), _sublane(out_dtype))

    cap = _vmem_capacity_bytes()
    budget = max(16 << 20, cap // 2 - (4 << 20))
    resident = 2 * sum(wt.size * jnp.dtype(wt.dtype).itemsize + b.size * 4
                       for wt, b in prepared)
    # TODO(synk): if `resident` alone exceeds the VMEM budget (very wide
    # layers), fall back to per-layer siren_forward calls with N tiling.
    per_row = 2 * (dim_in * x_sz + N_out_p * o_sz) + 2 * max_w * 4
    tm = _choose_row_tile(batch, per_row, resident, budget, sub, tm)

    grid = (pl.cdiv(batch, tm),)
    vmem_need = resident + tm * per_row + (2 << 20)
    vmem_limit = int(min(cap, max(32 << 20, int(1.4 * vmem_need))))

    inputs = [x2]
    in_specs = [pl.BlockSpec((tm, dim_in), lambda i: (i, 0))]
    for wt, b in prepared:
        inputs.extend([wt, b])
        in_specs.append(pl.BlockSpec(wt.shape, lambda i: (0, 0)))
        in_specs.append(pl.BlockSpec(b.shape, lambda i: (0, 0)))

    out = pl.pallas_call(
        _make_fused_siren_kernel(num_layers, compute_dtype),
        out_shape=jax.ShapeDtypeStruct((batch, N_out_p), out_dtype),
        grid_spec=pltpu.PrefetchScalarGridSpec(
            num_scalar_prefetch=0,
            grid=grid,
            in_specs=in_specs,
            out_specs=pl.BlockSpec((tm, N_out_p), lambda i: (i, 0)),
        ),
        compiler_params=pltpu.CompilerParams(
            dimension_semantics=("parallel",),
            vmem_limit_bytes=vmem_limit,
        ),
    )(*inputs)

    if N_out_p != dim_out:
        out = out[:, :dim_out]
    return out.reshape(*lead, dim_out)


# ----------------------------------------------------------------------------
# Init matching Siren.init_
# ----------------------------------------------------------------------------
def init_siren_params(key, dim_in, dim_out, w0=30.0, c=6.0, is_first=False):
    w_std = (1.0 / dim_in) if is_first else (math.sqrt(c / dim_in) / w0)
    kw, kb = jax.random.split(key)
    weight = jax.random.uniform(kw, (dim_out, dim_in), jnp.float32,
                                minval=-w_std, maxval=w_std)
    bias = jax.random.uniform(kb, (dim_out,), jnp.float32,
                              minval=-w_std, maxval=w_std)
    return weight, bias


# TODO(synk): custom `activation` modules other than Sine are not lowered;
# the kernels hard-code the sine activation.

# ----------------------------------------------------------------------------
# Demo / correctness check
# ----------------------------------------------------------------------------
if __name__ == "__main__":
    key = jax.random.PRNGKey(0)
    k_x, k_p, k_m = jax.random.split(key, 3)

    # ---- single Siren layer (matches the PyTorch module) ----
    batch, dim_in, dim_out = 64, 32, 64
    w0 = 30.0

    x = jax.random.normal(k_x, (batch, dim_in), jnp.float32)
    weight, bias = init_siren_params(k_p, dim_in, dim_out, w0=w0, c=6.0,
                                     is_first=True)
    ref = jnp.sin(w0 * (x @ weight.T + bias))

    # f32 compute path: strict check of the kernel semantics.
    wt32, b32 = prepare_siren_params(weight, bias, w0=w0,
                                     compute_dtype=jnp.float32)
    out32 = jax.block_until_ready(siren_forward(x, wt32, b32, dim_out))
    assert out32.shape == (batch, dim_out)
    err32 = float(jnp.max(jnp.abs(out32 - ref)))
    assert err32 < 1e-4, err32

    # bf16 compute path (perf default) vs a bf16-emulated reference.
    wtbf, bbf = prepare_siren_params(weight, bias, w0=w0,
                                     compute_dtype=jnp.bfloat16)
    outbf = jax.block_until_ready(
        siren_forward(x, wtbf, bbf, dim_out, out_dtype=jnp.float32))
    xb = x.astype(jnp.bfloat16).astype(jnp.float32)
    wb = (w0 * weight).T.astype(jnp.bfloat16).astype(jnp.float32)
    ref_bf = jnp.sin(xb @ wb + w0 * bias)
    assert outbf.shape == (batch, dim_out)
    errbf = float(jnp.max(jnp.abs(outbf - ref_bf)))
    assert errbf < 5e-3, errbf

    # ---- fused 3-layer Siren MLP (weights resident in VMEM), f32 strict ----
    dims = [32, 64, 64, 48]
    keys = jax.random.split(k_m, len(dims) - 1)
    layers = []
    for l in range(len(dims) - 1):
        wl, bl = init_siren_params(keys[l], dims[l], dims[l + 1], w0=w0,
                                   c=6.0, is_first=(l == 0))
        layers.append((wl, bl))
    prepared = prepare_siren_mlp_params(layers, w0=w0,
                                        compute_dtype=jnp.float32)
    out_mlp = jax.block_until_ready(siren_mlp_forward(x, prepared, dims[-1]))

    h = x
    for wl, bl in layers:
        h = jnp.sin(w0 * (h @ wl.T + bl))
    assert out_mlp.shape == (batch, dims[-1])
    err_mlp = float(jnp.max(jnp.abs(out_mlp - h)))
    assert err_mlp < 2e-4, err_mlp

    print("KERNEL_OK")
</pallas_src>

<mosaic_0001>
module attributes {stable_mosaic.version = 11 : i64} {
  func.func @siren_kernel(%arg0: i32, %arg1: i32, %arg2: memref<64x32xf32, #tpu.memory_space<vmem>>, %arg3: memref<32x128xf32, #tpu.memory_space<vmem>>, %arg4: memref<1x128xf32, #tpu.memory_space<vmem>>, %arg5: memref<64x128xf32, #tpu.memory_space<vmem>>) attributes {dimension_semantics = [#tpu.dimension_semantics<parallel>, #tpu.dimension_semantics<parallel>], iteration_bounds = array<i64: 1, 1>, scalar_prefetch = 0 : i64, scratch_operands = 0 : i64, tpu.core_type = #tpu.core_type<tc>, window_params = [{transform_indices = @transform_0, window_bounds = array<i64: 64, 32>}, {transform_indices = @transform_1, window_bounds = array<i64: 32, 128>}, {transform_indices = @transform_2, window_bounds = array<i64: 1, 128>}, {transform_indices = @transform_3, window_bounds = array<i64: 64, 128>}]} {
    %c0 = arith.constant 0 : index
    %c0_0 = arith.constant 0 : index
    %0 = vector.load %arg2[%c0, %c0_0] : memref<64x32xf32, #tpu.memory_space<vmem>>, vector<64x32xf32>
    %c0_1 = arith.constant 0 : index
    %c0_2 = arith.constant 0 : index
    %1 = vector.load %arg3[%c0_1, %c0_2] : memref<32x128xf32, #tpu.memory_space<vmem>>, vector<32x128xf32>
    %cst = arith.constant dense<0.000000e+00> : vector<64x128xf32>
    %2 = tpu.matmul %0, %1, %cst {dimension_numbers = #tpu.dot_dimension_numbers<[1], [0], [0], [1], [0, 0, 1, 1], [], []>} : vector<64x32xf32>, vector<32x128xf32>, vector<64x128xf32> -> vector<64x128xf32>
    %c0_3 = arith.constant 0 : index
    %c0_4 = arith.constant 0 : index
    %3 = vector.load %arg4[%c0_3, %c0_4] : memref<1x128xf32, #tpu.memory_space<vmem>>, vector<1x128xf32>
    %4 = vector.broadcast %3 : vector<1x128xf32> to vector<64x128xf32>
    %5 = arith.addf %2, %4 : vector<64x128xf32>
    %6 = math.sin %5 : vector<64x128xf32>
    %c0_5 = arith.constant 0 : index
    %c0_6 = arith.constant 0 : index
    %7 = vector.load %arg5[%c0_5, %c0_6] : memref<64x128xf32, #tpu.memory_space<vmem>>, vector<64x128xf32>
    tpu.vector_store %arg5[%c0_5, %c0_6], %6 {strides = array<i32>} : memref<64x128xf32, #tpu.memory_space<vmem>>, vector<64x128xf32>,
    return
  }
  func.func @transform_0(%arg0: i32, %arg1: i32) -> (i32, i32) {
    %c0_i32 = arith.constant 0 : i32
    %c0_i32_0 = arith.constant 0 : i32
    return %arg0, %c0_i32 : i32, i32
  }
  func.func @transform_1(%arg0: i32, %arg1: i32) -> (i32, i32) {
    %c0_i32 = arith.constant 0 : i32
    %c0_i32_0 = arith.constant 0 : i32
    return %c0_i32, %arg1 : i32, i32
  }
  func.func @transform_2(%arg0: i32, %arg1: i32) -> (i32, i32) {
    %c0_i32 = arith.constant 0 : i32
    %c0_i32_0 = arith.constant 0 : i32
    return %c0_i32, %arg1 : i32, i32
  }
  func.func @transform_3(%arg0: i32, %arg1: i32) -> (i32, i32) {
    %c0_i32 = arith.constant 0 : i32
    return %arg0, %arg1 : i32, i32
  }
}

</mosaic_0001>

<bundles_post_ra>
// kernel: tpu_custom_call.1
= control target key start
LH: loop header
LB: loop body
LE: loop exit
PB: predicated region body
PF: predicated region fallthrough
CT: control target
= control target key end

     0   :  { %s1820_s0 = inlined_call_operand.vmem [shape: f32[64,32], index: 0, kind: input, shape index: {}]   ;;  %s1821_s1 = inlined_call_operand.vmem [shape: f32[32,128], index: 1, kind: input, shape index: {}]   ;;  %s1822_s2 = inlined_call_operand.vmem [shape: f32[1,128], index: 2, kind: input, shape index: {}]   ;;  %s1823_s3 = inlined_call_operand.hbm [shape: f32[64,128], index: 3, kind: output, shape index: {}]  }
   0x1   :  { %v26_v0 = vld [vmem:[%s1821_s1 + $0x18] sm:$0xff]  ;;  %v25_v1 = vld [vmem:[%s1821_s1 + $0x10] sm:$0xff]  ;;  %v24_v2 = vld [vmem:[%s1821_s1 + $0x8] sm:$0xff] }
   0x2   :  { %1073 = vmatprep.subr.mxu0 %v26_v0  ;;  %1093 = vmatprep.subr.mxu1 %v26_v0  ;;  %v23_v3 = vld [vmem:[%s1821_s1] sm:$0xff] }
   0x3   :  { %1074 = vmatpush3.msra.mxu0 %v26_v0  ;;  %1097 = vmatpush3.msra.mxu1 %v26_v0 }
   0x4   :  { %1075 = vmatprep.subr.mxu0 %v25_v1  ;;  %1094 = vmatprep.subr.mxu1 %v25_v1 }
   0x5   :  { %1076 = vmatpush3.msra.mxu0 %v25_v1  ;;  %1098 = vmatpush3.msra.mxu1 %v25_v1 }
   0x6   :  { %8 = vsyncpa [#allocation3], 0  ;;  %1077 = vmatprep.subr.mxu0 %v24_v2  ;;  %1095 = vmatprep.subr.mxu1 %v24_v2  ;;  %v15_v4 = vld [vmem:[%s1820_s0] sm:$0xff]  ;;  %vm34_vm0 = vcmask 261120   ;;  %v16_v6 = vld [vmem:[%s1820_s0 + $0x8] sm:$0xff] }
   0x7   :  { %1078 = vmatpush3.msra.mxu0 %v24_v2  ;;  %1099 = vmatpush3.msra.mxu1 %v24_v2  ;;  %v19_v5 = vld [vmem:[%s1820_s0 + $0x20] sm:$0xff]  ;;  %v20_v7 = vld [vmem:[%s1820_s0 + $0x28] sm:$0xff]  ;;  %v17_v8 = vld [vmem:[%s1820_s0 + $0x10] sm:$0xff]  ;;  %v1197_v48 = vmov 683565275  }
   0x8   :  { %1079 = vmatprep.subr.mxu0 %v23_v3  ;;  %1096 = vmatprep.subr.mxu1 %v23_v3  ;;  %v21_v9 = vld [vmem:[%s1820_s0 + $0x30] sm:$0xff]  ;;  %v18_v10 = vld [vmem:[%s1820_s0 + $0x18] sm:$0xff]  ;;  %v1273_v12 = vld [vmem:[%s1822_s2] ss:$0 sm:$0xff]  ;;  %v1198_v52 = vmov 2475754826  }
   0x9   :  { %1080 = vmatpush3.msra.mxu0 %v23_v3  ;;  %1100 = vmatpush3.msra.mxu1 %v23_v3  ;;  %v22_v11 = vld [vmem:[%s1820_s0 + $0x38] sm:$0xff]  ;;  %v1199_v54 = vmov 2131351028   ;;  %v1200_v56 = vmov 2102212464  }
   0xa   :  { %1081 = vmatprep.mubr.msk.f32.mxu0 %vm34_vm0, %v15_v4  ;;  %1087 = vmatprep.mubr.msk.f32.mxu1 %vm34_vm0, %v19_v5  ;;  %v1201_v58 = vmov 920167782   ;;  %v1202_v1 = vmov 1326507024  }
   0xb   :  { %1082 = vmatmul.mubr.msk.f32.vlgmr.msra.gmra.mxu0 %vm34_vm0, %v16_v6  ;;  %1088 = vmatmul.mubr.msk.f32.vlgmr.msra.gmra.mxu1 %vm34_vm0, %v20_v7 }
   0xc   :  { %1084 = vmatprep.mubr.msk.f32.mxu0 %vm34_vm0, %v17_v8  ;;  %1090 = vmatprep.mubr.msk.f32.mxu1 %vm34_vm0, %v21_v9 }
   0xf   :  { %1085 = vmatmul.mubr.msk.f32.gmra.mxu0 %vm34_vm0, %v18_v10  ;;  %1091 = vmatmul.mubr.msk.f32.gmra.mxu1 %vm34_vm0, %v22_v11 }
  0xcb   :  { %v1083_v13 = vpop.f32.mrf.mxu0  ;;  %v1089_v14 = vpop.f32.mrf.mxu1 }
  0xcc   :  { %v1276_v15 = vadd.f32 %v1083_v13, %v1273_v12  ;;  %v1279_v16 = vadd.f32 %v1089_v14, %v1273_v12 }
  0xcd   :  { %v125_v17 = vpop.f32.mrf.mxu0  ;;  %v145_v36 = vpop.f32.mrf.mxu1 }
  0xce   :  { %v268_v18 = vand.u32 2147483647, %v1276_v15  ;;  %v271_v19 = vand.u32 2139095040, %v1276_v15  ;;  %v684_v20 = vand.u32 2147483647, %v1279_v16  ;;  %v687_v21 = vand.u32 2139095040, %v1279_v16 }
  0xcf   :  { %v1288_v24 = vadd.f32 %v1273_v12, %v125_v17  ;;  %v1295_v42 = vadd.f32 %v1273_v12, %v145_v36  ;;  %vm270_vm14 = vcmp.lt.s32.totalorder %v1276_v15, 0 }
  0xd0   :  { %v272_v22 = vshrl.u32 %v271_v19, 23  ;;  %v275_v23 = vand.u32 8388607, %v268_v18  ;;  %v688_v25 = vshrl.u32 %v687_v21, 23  ;;  %v691_v26 = vand.u32 8388607, %v684_v20 }
  0xd1   :  { %v167_v29 = vand.u32 2139095040, %v1288_v24  ;;  %v164_v34 = vand.u32 2147483647, %v1288_v24  ;;  %vm1400_vm15 = vcmp.le.f32.partialorder %v268_v18, 0.7853982 }
  0xd2   :  { %v1033_v27 = vadd.s32 4294967169, %v272_v22  ;;  %v1049_v28 = vadd.s32 4294967169, %v688_v25  ;;  %v276_v30 = vor.u32 8388608, %v275_v23  ;;  %v692_v32 = vor.u32 8388608, %v691_v26 }
  0xd3   :  { %v168_v35 = vshrl.u32 %v167_v29, 23  ;;  %v1305_v46 = vand.u32 8388607, %v164_v34 }
  0xd4   :  { %v278_v31 = vadd.s32 1, %v1033_v27  ;;  %v694_v33 = vadd.s32 1, %v1049_v28  ;;  %v1297_v43 = vshll.u32 %v276_v30, 8  ;;  %v1301_v45 = vshll.u32 %v692_v32, 8 }
  0xd5   :  { %v1029_v38 = vadd.s32 4294967169, %v168_v35 }
  0xd6   :  { %vm279_vm1 = vcmp.gt.s32.totalorder %v278_v31, 0  ;;  %vm695_vm2 = vcmp.gt.s32.totalorder %v694_v33, 0 }
  0xd7   :  { %v280_v37 = vsel %vm279_vm1, %v278_v31, 0  ;;  %v696_v41 = vsel %vm695_vm2, %v694_v33, 0  ;;  %v1308_v51 = vadd.s32 1, %v1029_v38 }
  0xd8   :  { %v281_v39 = vshrl.u32 %v280_v37, 5  ;;  %v282_v40 = vand.u32 31, %v280_v37  ;;  %v1299_v44 = vshrl.u32 %v696_v41, 5  ;;  %v698_v50 = vand.u32 31, %v696_v41 }
  0xd9   :  { %vm175_vm12 = vcmp.gt.s32.totalorder %v1308_v51, 0 }
  0xda   :  { %v283_v47 = vsub.s32 32, %v282_v40  ;;  %v285_v49 = vshll.u32 %v1197_v48, %v282_v40  ;;  %v288_v53 = vshll.u32 %v1198_v52, %v282_v40  ;;  %v291_v55 = vshll.u32 %v1199_v54, %v282_v40 }
  0xdb   :  { %v294_v57 = vshll.u32 %v1200_v56, %v282_v40  ;;  %v297_v59 = vshll.u32 %v1201_v58, %v282_v40  ;;  %vm300_vm3 = vcmp.lt.s32.totalorder %v281_v39, 1  ;;  %vm301_vm4 = vcmp.lt.s32.totalorder %v281_v39, 2 }
  0xdc   :  { %v286_v60 = vshrl.u32 %v1198_v52, %v283_v47  ;;  %v289_v61 = vshrl.u32 %v1199_v54, %v283_v47  ;;  %v292_v62 = vshrl.u32 %v1200_v56, %v283_v47  ;;  %v284_v63 = vshrl.u32 %v1197_v48, %v283_v47 }
  0xdd   :  { %v295_v0 = vshrl.u32 %v1201_v58, %v283_v47  ;;  %v298_v2 = vshrl.u32 %v1202_v1, %v283_v47  ;;  %v699_v6 = vsub.s32 32, %v698_v50  ;;  %vm302_vm5 = vcmp.lt.s32.totalorder %v281_v39, 3 }
  0xde   :  { %v287_v3 = vor.u32 %v286_v60, %v285_v49  ;;  %v290_v4 = vor.u32 %v289_v61, %v288_v53  ;;  %v293_v5 = vor.u32 %v292_v62, %v291_v55  ;;  %vm303_vm6 = vcmp.lt.s32.totalorder %v281_v39, 4 }
  0xdf   :  { %v296_v7 = vor.u32 %v295_v0, %v294_v57  ;;  %v299_v8 = vor.u32 %v298_v2, %v297_v59  ;;  %v701_v21 = vshll.u32 %v1197_v48, %v698_v50  ;;  %v702_v25 = vshrl.u32 %v1198_v52, %v699_v6 }
  0xe0   :  { %v304_v9 = vsel %vm300_vm3, %v284_v63, %v287_v3  ;;  %v305_v10 = vsel %vm303_vm6, %v293_v5, 2102212464  ;;  %v308_v11 = vsel %vm300_vm3, %v287_v3, %v290_v4  ;;  %v312_v13 = vsel %vm300_vm3, %v290_v4, %v293_v5 }
  0xe1   :  { %v306_v14 = vsel %vm302_vm5, %v290_v4, %v305_v10  ;;  %v309_v17 = vsel %vm303_vm6, %v296_v7, 920167782  ;;  %v313_v19 = vsel %vm303_vm6, %v299_v8, 1326507024  ;;  %v704_v26 = vshll.u32 %v1198_v52, %v698_v50 }
  0xe2   :  { %v310_v22 = vsel %vm302_vm5, %v293_v5, %v309_v17  ;;  %v314_v23 = vsel %vm302_vm5, %v296_v7, %v313_v19  ;;  %v307_v27 = vsel %vm301_vm4, %v304_v9, %v306_v14  ;;  %v705_v30 = vshrl.u32 %v1199_v54, %v699_v6 }
  0xe3   :  { %v311_v28 = vsel %vm301_vm4, %v308_v11, %v310_v22  ;;  %v315_v29 = vsel %vm301_vm4, %v312_v13, %v314_v23  ;;  %v703_v36 = vor.u32 %v702_v25, %v701_v21  ;;  %v707_v38 = vshll.u32 %v1199_v54, %v698_v50 }
  0xe4   :  { %v1331_v31 = vmul.u32.u64.low %v1297_v43, %v315_v29  ;;  %v1332_v32 = vmul.u32.u64.high %v1297_v43, %v315_v29, %v1331_v31  ;;  %v1335_v33 = vmul.u32.u64.low %v1297_v43, %v311_v28  ;;  %v1336_v35 = vmul.u32.u64.high %v1297_v43, %v311_v28, %v1335_v33 }
  0xe5   :  { %v706_v37 = vor.u32 %v705_v30, %v704_v26  ;;  %v708_v40 = vshrl.u32 %v1200_v56, %v699_v6  ;;  %v700_v41 = vshrl.u32 %v1197_v48, %v699_v6  ;;  %v710_v39 = vshll.u32 %v1200_v56, %v698_v50 }
  0xe6   :  { %v711_v47 = vshrl.u32 %v1201_v58, %v699_v6  ;;  %v714_v49 = vshrl.u32 %v1202_v1, %v699_v6  ;;  %v323_v53 = vmul.u32 %v1297_v43, %v307_v27  ;;  %v713_v57 = vshll.u32 %v1201_v58, %v698_v50 }
  0xe7   :  { %v709_v55 = vor.u32 %v708_v40, %v707_v38  ;;  %vm716_vm7 = vcmp.lt.s32.totalorder %v1299_v44, 1  ;;  %vm325_vm8 = vc.u32 %v1332_v32, %v1335_v33  ;;  %v326_v59 = vadd.s32 1, %v1336_v35 }
  0xe8   :  { %v712_v60 = vor.u32 %v711_v47, %v710_v39  ;;  %vm717_vm9 = vcmp.lt.s32.totalorder %v1299_v44, 2  ;;  %v715_v61 = vor.u32 %v714_v49, %v713_v57  ;;  %vm718_vm10 = vcmp.lt.s32.totalorder %v1299_v44, 3 }
  0xe9   :  { %vm719_vm11 = vcmp.lt.s32.totalorder %v1299_v44, 4  ;;  %v724_v62 = vsel %vm716_vm7, %v703_v36, %v706_v37  ;;  %v327_v43 = vsel %vm325_vm8, %v326_v59, %v1336_v35  ;;  %v728_v50 = vsel %vm716_vm7, %v706_v37, %v709_v55 }
  0xea   :  { %v721_v63 = vsel %vm719_vm11, %v709_v55, 2102212464  ;;  %v725_v0 = vsel %vm719_vm11, %v712_v60, 920167782  ;;  %v328_v2 = vadd.s32 %v327_v43, %v323_v53  ;;  %v720_v3 = vsel %vm716_vm7, %v700_v41, %v703_v36 }
  0xeb   :  { %v726_v4 = vsel %vm718_vm10, %v709_v55, %v725_v0  ;;  %v729_v5 = vsel %vm719_vm11, %v715_v61, 1326507024  ;;  %v722_v6 = vsel %vm718_vm10, %v706_v37, %v721_v63  ;;  %v176_v19 = vsel %vm175_vm12, %v1308_v51, 0 }
  0xec   :  { %v727_v7 = vsel %vm717_vm9, %v724_v62, %v726_v4  ;;  %v730_v8 = vsel %vm718_vm10, %v712_v60, %v729_v5  ;;  %v329_v9 = vadd.s32 536870912, %v328_v2  ;;  %v723_v22 = vsel %vm717_vm9, %v720_v3, %v722_v6 }
  0xed   :  { %v731_v10 = vsel %vm717_vm9, %v728_v50, %v730_v8  ;;  %v1359_v11 = vmul.u32.u64.low %v1301_v45, %v727_v7  ;;  %v1360_v13 = vmul.u32.u64.high %v1301_v45, %v727_v7, %v1359_v11  ;;  %v178_v23 = vand.u32 31, %v176_v19 }
  0xee   :  { %v1364_v14 = vmul.u32.u64.low %v1301_v45, %v731_v10  ;;  %v1365_v17 = vmul.u32.u64.high %v1301_v45, %v731_v10, %v1364_v14  ;;  %v330_v21 = vshrl.u32 %v329_v9, 30  ;;  %v583_v25 = vand.u32 2139095040, %v1295_v42 }
  0xef   :  { %v742_v27 = vadd.s32 1, %v1360_v13  ;;  %v172_v28 = vor.u32 8388608, %v1305_v46  ;;  %v739_v29 = vmul.u32 %v1301_v45, %v723_v22  ;;  %v179_v30 = vsub.s32 32, %v178_v23 }
  0xf0   :  { %v331_v26 = vshll.u32 %v330_v21, 30  ;;  %vm741_vm13 = vc.u32 %v1365_v17, %v1359_v11  ;;  %v584_v44 = vshrl.u32 %v583_v25, 23  ;;  %v324_v36 = vadd.s32 %v1335_v33, %v1332_v32 }
  0xf1   :  { %v743_v51 = vsel %vm741_vm13, %v742_v27, %v1360_v13  ;;  %v1382_v38 = vshll.u32 %v172_v28, 8  ;;  %v580_v45 = vand.u32 2147483647, %v1295_v42  ;;  %v1385_v40 = vshrl.u32 %v176_v19, 5 }
  0xf2   :  { %v1376_v31 = vsub.s32 %v328_v2, %v331_v26  ;;  %v744_v35 = vadd.s32 %v743_v51, %v739_v29  ;;  %v182_v41 = vshrl.u32 %v1198_v52, %v179_v30  ;;  %v185_v39 = vshrl.u32 %v1199_v54, %v179_v30 }
  0xf3   :  { %v188_v49 = vshrl.u32 %v1200_v56, %v179_v30  ;;  %v191_v53 = vshrl.u32 %v1201_v58, %v179_v30  ;;  %v1392_v32 = vadd.s32 4294967169, %v584_v44  ;;  %v354_v33 = vsub.s32 4, %v330_v21 }
  0xf4   :  { %v334_v37 = vsub.s32 0, %v1376_v31  ;;  %v745_v46 = vadd.s32 536870912, %v744_v35  ;;  %v181_v57 = vshll.u32 %v1197_v48, %v178_v23  ;;  %v184_v59 = vshll.u32 %v1198_v52, %v178_v23 }
  0xf5   :  { %v187_v62 = vshll.u32 %v1199_v54, %v178_v23  ;;  %v190_v43 = vshll.u32 %v1200_v56, %v178_v23  ;;  %v194_v63 = vshrl.u32 %v1202_v1, %v179_v30  ;;  %v1410_v3 = vand.u32 8388607, %v580_v45 }
  0xf6   :  { %v1034_v47 = vmin.u32 %v334_v37, %v1376_v31  ;;  %v1394_v55 = vshrl.u32 %v745_v46, 30  ;;  %v183_v50 = vor.u32 %v182_v41, %v181_v57  ;;  %v186_v2 = vor.u32 %v185_v39, %v184_v59 }
  0xf7   :  { %v189_v18 = vor.u32 %v188_v49, %v187_v62  ;;  %v192_v5 = vor.u32 %v191_v53, %v190_v43  ;;  %v193_v6 = vshll.u32 %v1201_v58, %v178_v23  ;;  %v355_v7 = vsel %vm270_vm14, %v354_v33, %v330_v21 }
  0xf8   :  { %v336_v61 = vclz %v1034_v47  ;;  %v747_v0 = vshll.u32 %v1394_v55, 30  ;;  %v180_v9 = vshrl.u32 %v1197_v48, %v179_v30  ;;  %vm196_vm0 = vcmp.lt.s32.totalorder %v1385_v40, 1 }
  0xf9   :  { %v195_v10 = vor.u32 %v194_v63, %v193_v6  ;;  %vm197_vm2 = vcmp.lt.s32.totalorder %v1385_v40, 2  ;;  %vm198_vm3 = vcmp.lt.s32.totalorder %v1385_v40, 3  ;;  %vm686_vm4 = vcmp.lt.s32.totalorder %v1279_v16, 0 }
  0xfa   :  { %v1035_v4 = vadd.s32 4294967294, %v336_v61  ;;  %v1415_v8 = vsub.s32 %v744_v35, %v747_v0  ;;  %vm199_vm5 = vcmp.lt.s32.totalorder %v1385_v40, 4  ;;  %v204_v19 = vsel %vm196_vm0, %v183_v50, %v186_v2 }
  0xfb   :  { %v201_v23 = vsel %vm199_vm5, %v189_v18, 2102212464  ;;  %v205_v25 = vsel %vm199_vm5, %v192_v5, 920167782  ;;  %v208_v29 = vsel %vm196_vm0, %v186_v2, %v189_v18  ;;  %v209_v35 = vsel %vm199_vm5, %v195_v10, 1326507024 }
  0xfc   :  { %vm1036_vm1 = vcmp.lt.s32.totalorder %v1035_v4, 0  ;;  %v750_v14 = vsub.s32 0, %v1415_v8  ;;  %v206_v28 = vsel %vm198_vm3, %v189_v18, %v205_v25  ;;  %v357_v37 = vsel %vm1400_vm15, 0, %v355_v7 }
  0xfd   :  { %v339_v13 = vsel %vm1036_vm1, 0, %v1035_v4  ;;  %v207_v44 = vsel %vm197_vm2, %v204_v19, %v206_v28  ;;  %vm1438_vm6 = vcmp.le.f32.partialorder %v684_v20, 0.7853982  ;;  %v200_v41 = vsel %vm196_vm0, %v180_v9, %v183_v50 }
  0xfe   :  { %v340_v21 = vsub.s32 32, %v339_v13  ;;  %v344_v22 = vsub.s32 4294967266, %v339_v13  ;;  %v341_v26 = vshll.u32 %v1376_v31, %v339_v13  ;;  %v1050_v27 = vmin.u32 %v750_v14, %v1415_v8 }
  0xff   :  { %v770_v49 = vsub.s32 4, %v1394_v55  ;;  %v210_v53 = vsel %vm198_vm3, %v192_v5, %v209_v35  ;;  %v1452_v57 = vmul.u32.u64.low %v1382_v38, %v207_v44  ;;  %v1453_v59 = vmul.u32.u64.high %v1382_v38, %v207_v44, %v1452_v57 }
 0x100   :  { %v342_v30 = vshrl.u32 %v324_v36, %v340_v21  ;;  %v345_v51 = vadd.s32 127, %v344_v22  ;;  %v752_v46 = vclz %v1050_v27  ;;  %v202_v36 = vsel %vm198_vm3, %v186_v2, %v201_v23  ;;  %v1086_v21 = vpop.f32.mrf.mxu0 }
 0x101   :  { %v211_v20 = vsel %vm197_vm2, %v208_v29, %v210_v53  ;;  %v203_v62 = vsel %vm197_vm2, %v200_v41, %v202_v36  ;;  %v361_v0 = vadd.s32 3, %v357_v37  ;;  %v740_v50 = vadd.s32 %v1359_v11, %v1365_v17 }
 0x102   :  { %v343_v39 = vor.u32 %v342_v30, %v341_v26  ;;  %v346_v47 = vshll.u32 %v345_v51, 23  ;;  %v1051_v33 = vadd.s32 4294967294, %v752_v46  ;;  %v590_v2 = vadd.s32 1, %v1392_v32 }
 0x103   :  { %v1459_v43 = vmul.u32.u64.low %v1382_v38, %v211_v20  ;;  %v1460_v63 = vmul.u32.u64.high %v1382_v38, %v211_v20, %v1459_v43  ;;  %v771_v6 = vsel %vm686_vm4, %v770_v49, %v1394_v55  ;;  %v219_v9 = vmul.u32 %v1382_v38, %v203_v62 }
 0x104   :  { %v347_v61 = vor.u32 4788187, %v346_v47  ;;  %vm1052_vm7 = vcmp.lt.s32.totalorder %v1051_v33, 0  ;;  %v350_v18 = vcvt.s32.f32 %v343_v39  ;;  %v222_v10 = vadd.s32 1, %v1453_v59 }
 0x105   :  { %v755_v5 = vsel %vm1052_vm7, 0, %v1051_v33  ;;  %vm221_vm8 = vc.u32 %v1460_v63, %v1452_v57  ;;  %vm591_vm9 = vcmp.gt.s32.totalorder %v590_v2, 0  ;;  %v773_v22 = vsel %vm1438_vm6, 0, %v771_v6 }
 0x106   :  { %v348_v4 = vand.u32 2147483647, %v347_v61  ;;  %v756_v40 = vsub.s32 32, %v755_v5  ;;  %v760_v7 = vsub.s32 4294967266, %v755_v5  ;;  %v757_v14 = vshll.u32 %v1415_v8, %v755_v5 }
 0x107   :  { %v223_v32 = vsel %vm221_vm8, %v222_v10, %v1453_v59  ;;  %v592_v19 = vsel %vm591_vm9, %v590_v2, 0  ;;  %v1479_v29 = vadd.f32 %v1086_v21, %v1273_v12  ;;  %v1484_v51 = vand.u32 3, %v361_v0 }
 0x108   :  { %v351_v13 = vmul.f32 %v350_v18, %v348_v4  ;;  %v758_v11 = vshrl.u32 %v740_v50, %v756_v40  ;;  %v761_v17 = vadd.s32 127, %v760_v7  ;;  %v224_v38 = vadd.s32 %v223_v32, %v219_v9 }
 0x109   :  { %v594_v23 = vand.u32 31, %v592_v19  ;;  %v1486_v35 = vadd.s32 3, %v773_v22  ;;  %v588_v46 = vor.u32 8388608, %v1410_v3  ;;  %vm166_vm10 = vcmp.lt.s32.totalorder %v1288_v24, 0 }
 0x10a   :  { %v352_v55 = vxor.u32 2147483648, %v351_v13  ;;  %v759_v25 = vor.u32 %v758_v11, %v757_v14  ;;  %v762_v26 = vshll.u32 %v761_v17, 23  ;;  %v225_v27 = vadd.s32 536870912, %v224_v38 }
 0x10b   :  { %v595_v28 = vsub.s32 32, %v594_v23  ;;  %v1492_v49 = vshrl.u32 %v592_v19, 5  ;;  %v597_v53 = vshll.u32 %v1197_v48, %v594_v23  ;;  %v600_v59 = vshll.u32 %v1198_v52, %v594_v23 }
 0x10c   :  { %v353_v8 = vsel %vm270_vm14, %v352_v55, %v351_v13  ;;  %v763_v44 = vor.u32 4788187, %v762_v26  ;;  %v226_v37 = vshrl.u32 %v225_v27, 30  ;;  %v766_v39 = vcvt.s32.f32 %v759_v25 }
 0x10d   :  { %v356_v30 = vsel %vm1400_vm15, %v1276_v15, %v353_v8  ;;  %v598_v41 = vshrl.u32 %v1198_v52, %v595_v28  ;;  %v601_v47 = vshrl.u32 %v1199_v54, %v595_v28  ;;  %v604_v33 = vshrl.u32 %v1200_v56, %v595_v28 }
 0x10e   :  { %1142 = vcosq.f32 %v356_v30  ;;  %v764_v36 = vand.u32 2147483647, %v763_v44  ;;  %v227_v60 = vshll.u32 %v226_v37, 30  ;;  %v606_v3 = vshll.u32 %v1200_v56, %v594_v23 }
 0x10f   :  { %1144 = vsinq.f32 %v356_v30  ;;  %v607_v61 = vshrl.u32 %v1201_v58, %v595_v28  ;;  %v599_v43 = vor.u32 %v598_v41, %v597_v53  ;;  %v603_v0 = vshll.u32 %v1199_v54, %v594_v23 }
 0x110   :  { %v767_v20 = vmul.f32 %v766_v39, %v764_v36  ;;  %v1499_v62 = vsub.s32 %v224_v38, %v227_v60  ;;  %v479_v50 = vand.u32 2139095040, %v1479_v29  ;;  %v602_v4 = vor.u32 %v601_v47, %v600_v59 }
 0x111   :  { %v608_v18 = vor.u32 %v607_v61, %v606_v3  ;;  %v610_v5 = vshrl.u32 %v1202_v1, %v595_v28  ;;  %v220_v6 = vadd.s32 %v1452_v57, %v1460_v63  ;;  %v605_v7 = vor.u32 %v604_v33, %v603_v0 }
 0x112   :  { %v768_v2 = vxor.u32 2147483648, %v767_v20  ;;  %v230_v40 = vsub.s32 0, %v1499_v62  ;;  %v609_v9 = vshll.u32 %v1201_v58, %v594_v23  ;;  %vm367_vm11 = vcmp.eq.s32.totalorder %v1484_v51, 2 }
 0x113   :  { %v250_v13 = vsub.s32 4, %v226_v37  ;;  %vm612_vm12 = vcmp.lt.s32.totalorder %v1492_v49, 1  ;;  %v628_v14 = vshll.u32 %v588_v46, 8  ;;  %vm364_vm13 = vcmp.eq.s32.totalorder %v1484_v51, 0 }
 0x114   :  { %v769_v10 = vsel %vm686_vm4, %v768_v2, %v767_v20  ;;  %v1030_v63 = vmin.u32 %v230_v40, %v1499_v62  ;;  %v611_v11 = vor.u32 %v610_v5, %v609_v9  ;;  %vm615_vm14 = vcmp.lt.s32.totalorder %v1492_v49, 4 }
 0x115   :  { %v772_v57 = vsel %vm1438_vm6, %v1279_v16, %v769_v10  ;;  %vm363_vm15 = vcmp.lt.s32.totalorder %v1484_v51, 2  ;;  %v596_v17 = vshrl.u32 %v1197_v48, %v595_v28  ;;  %v620_v32 = vsel %vm612_vm12, %v599_v43, %v602_v4 }
 0x116   :  { %1146 = vcosq.f32 %v772_v57  ;;  %v621_v19 = vsel %vm615_vm14, %v608_v18, 920167782  ;;  %vm360_vm0 = vweird.f32 %v1276_v15  ;;  %vm1527_vm1 = vcmp.le.f32.partialorder %v164_v34, 0.7853982 }
 0x117   :  { %1148 = vsinq.f32 %v772_v57  ;;  %v232_v21 = vclz %v1030_v63  ;;  %vm614_vm2 = vcmp.lt.s32.totalorder %v1492_v49, 3  ;;  %v617_v55 = vsel %vm615_vm14, %v605_v7, 2102212464 }
 0x118   :  { %v251_v22 = vsel %vm166_vm10, %v250_v13, %v226_v37  ;;  %vm613_vm3 = vcmp.lt.s32.totalorder %v1492_v49, 2  ;;  %v622_v38 = vsel %vm614_vm2, %v605_v7, %v621_v19  ;;  %v624_v23 = vsel %vm612_vm12, %v602_v4, %v605_v7 }
 0x119   :  { %v1031_v25 = vadd.s32 4294967294, %v232_v21  ;;  %v616_v34 = vsel %vm612_vm12, %v596_v17, %v599_v43  ;;  %v623_v26 = vsel %vm613_vm3, %v620_v32, %v622_v38  ;;  %v625_v8 = vsel %vm615_vm14, %v611_v11, 1326507024 }
 0x11a   :  { %v618_v28 = vsel %vm614_vm2, %v602_v4, %v617_v55  ;;  %v626_v30 = vsel %vm614_vm2, %v608_v18, %v625_v8  ;;  %v1545_v44 = vmul.u32.u64.low %v628_v14, %v623_v26  ;;  %v1546_v37 = vmul.u32.u64.high %v628_v14, %v623_v26, %v1545_v44 }
 0x11b   :  { %v1143_v27 = vpop.eup %1142  ;;  %vm1032_vm4 = vcmp.lt.s32.totalorder %v1031_v25, 0  ;;  %v627_v36 = vsel %vm613_vm3, %v624_v23, %v626_v30  ;;  %v480_v39 = vshrl.u32 %v479_v50, 23  ;;  %v619_v61 = vsel %vm613_vm3, %v616_v34, %v618_v28 }
 0x11c   :  { %v1145_v46 = vpop.eup %1144  ;;  %v368_v41 = vxor.u32 2147483648, %v1143_v27  ;;  %v235_v60 = vsel %vm1032_vm4, 0, %v1031_v25  ;;  %v1551_v53 = vmul.u32.u64.low %v628_v14, %v627_v36  ;;  %v1552_v33 = vmul.u32.u64.high %v628_v14, %v627_v36, %v1551_v53 }
 0x11d   :  { %v365_v47 = vxor.u32 2147483648, %v1145_v46  ;;  %v236_v59 = vsub.s32 32, %v235_v60  ;;  %v240_v3 = vsub.s32 4294967266, %v235_v60  ;;  %v778_v0 = vand.u32 3, %v1486_v35  ;;  %v1092_v35 = vpop.f32.mrf.mxu1 }
 0x11e   :  { %v369_v20 = vsel %vm367_vm11, %v368_v41, %v1145_v46  ;;  %v638_v50 = vadd.s32 1, %v1546_v37  ;;  %v1041_v2 = vadd.s32 4294967169, %v480_v39  ;;  %v237_v18 = vshll.u32 %v1499_v62, %v235_v60 }
 0x11f   :  { %v366_v43 = vsel %vm364_vm13, %v1143_v27, %v365_v47  ;;  %v238_v5 = vshrl.u32 %v220_v6, %v236_v59  ;;  %v241_v40 = vadd.s32 127, %v240_v3  ;;  %v253_v49 = vsel %vm1527_vm1, 0, %v251_v22 }
 0x120   :  { %v370_v4 = vsel %vm363_vm15, %v366_v43, %v369_v20  ;;  %v635_v9 = vmul.u32 %v628_v14, %v619_v61  ;;  %vm637_vm5 = vc.u32 %v1552_v33, %v1545_v44  ;;  %v486_v57 = vadd.s32 1, %v1041_v2 }
 0x121   :  { %v371_v7 = vsel %vm360_vm0, nan, %v370_v4  ;;  %v239_v10 = vor.u32 %v238_v5, %v237_v18  ;;  %v242_v13 = vshll.u32 %v241_v40, 23  ;;  %v639_v51 = vsel %vm637_vm5, %v638_v50, %v1546_v37 }
 0x122   :  { %997 = vst [vmem:[#allocation2 + $0x8] sm:$0xff] %v371_v7  ;;  %v640_v62 = vadd.s32 %v639_v51, %v635_v9  ;;  %v476_v6 = vand.u32 2147483647, %v1479_v29  ;;  %vm783_vm6 = vcmp.eq.s32.totalorder %v778_v0, 2  ;;  %vm487_vm7 = vcmp.gt.s32.totalorder %v486_v57, 0 }
 0x123   :  { %v1147_v63 = vpop.eup %1146  ;;  %v243_v15 = vor.u32 4788187, %v242_v13  ;;  %v1574_v11 = vadd.f32 %v1092_v35, %v1273_v12  ;;  %v257_v32 = vadd.s32 3, %v253_v49  ;;  %v488_v21 = vsel %vm487_vm7, %v486_v57, 0 }
 0x124   :  { %v1149_v14 = vpop.eup %1148  ;;  %v784_v17 = vxor.u32 2147483648, %v1147_v63  ;;  %v641_v19 = vadd.s32 536870912, %v640_v62  ;;  %v246_v38 = vcvt.s32.f32 %v239_v10  ;;  %v490_v23 = vand.u32 31, %v488_v21 }
 0x125   :  { %v781_v55 = vxor.u32 2147483648, %v1149_v14  ;;  %v244_v22 = vand.u32 2147483647, %v243_v15  ;;  %vm780_vm8 = vcmp.eq.s32.totalorder %v778_v0, 0  ;;  %v483_v26 = vand.u32 8388607, %v476_v6 }
 0x126   :  { %v785_v25 = vsel %vm783_vm6, %v784_v17, %v1149_v14  ;;  %v1576_v34 = vshrl.u32 %v641_v19, 30  ;;  %vm779_vm9 = vcmp.lt.s32.totalorder %v778_v0, 2  ;;  %v491_v28 = vsub.s32 32, %v490_v23 }
 0x127   :  { %v782_v8 = vsel %vm780_vm8, %v1147_v63, %v781_v55  ;;  %v247_v27 = vmul.f32 %v246_v38, %v244_v22  ;;  %vm776_vm11 = vweird.f32 %v1279_v16  ;;  %v1582_v36 = vand.u32 3, %v257_v32 }
 0x128   :  { %v786_v30 = vsel %vm779_vm9, %v782_v8, %v785_v25  ;;  %v643_v37 = vshll.u32 %v1576_v34, 30  ;;  %v494_v39 = vshrl.u32 %v1198_v52, %v491_v28  ;;  %v484_v60 = vor.u32 8388608, %v483_v26 }
 0x129   :  { %v787_v46 = vsel %vm776_vm11, nan, %v786_v30  ;;  %v248_v41 = vxor.u32 2147483648, %v247_v27  ;;  %v497_v53 = vshrl.u32 %v1199_v54, %v491_v28  ;;  %v895_v20 = vand.u32 2139095040, %v1574_v11 }
 0x12a   :  { %1001 = vst [vmem:[#allocation2 + $0x28] sm:$0xff] %v787_v46  ;;  %v1585_v47 = vsub.s32 %v640_v62, %v643_v37  ;;  %v489_v59 = vshrl.u32 %v488_v21, 5  ;;  %v493_v3 = vshll.u32 %v1197_v48, %v490_v23  ;;  %v500_v61 = vshrl.u32 %v1200_v56, %v491_v28 }
 0x12b   :  { %v249_v16 = vsel %vm166_vm10, %v248_v41, %v247_v27  ;;  %v496_v50 = vshll.u32 %v1198_v52, %v490_v23  ;;  %v499_v2 = vshll.u32 %v1199_v54, %v490_v23  ;;  %v502_v18 = vshll.u32 %v1200_v56, %v490_v23 }
 0x12c   :  { %v252_v43 = vsel %vm1527_vm1, %v1288_v24, %v249_v16  ;;  %v646_v0 = vsub.s32 0, %v1585_v47  ;;  %v495_v4 = vor.u32 %v494_v39, %v493_v3  ;;  %v503_v5 = vshrl.u32 %v1201_v58, %v491_v28 }
 0x12d   :  { %1150 = vcosq.f32 %v252_v43  ;;  %v498_v7 = vor.u32 %v497_v53, %v496_v50  ;;  %v501_v49 = vor.u32 %v500_v61, %v499_v2  ;;  %v505_v31 = vshll.u32 %v1201_v58, %v490_v23 }
 0x12e   :  { %1152 = vsinq.f32 %v252_v43  ;;  %v1046_v40 = vmin.u32 %v646_v0, %v1585_v47  ;;  %v504_v9 = vor.u32 %v503_v5, %v502_v18  ;;  %v506_v35 = vshrl.u32 %v1202_v1, %v491_v28 }
 0x12f   :  { %v524_v10 = vshll.u32 %v484_v60, 8  ;;  %v492_v51 = vshrl.u32 %v1197_v48, %v491_v28  ;;  %vm508_vm10 = vcmp.lt.s32.totalorder %v489_v59, 1  ;;  %v896_v57 = vshrl.u32 %v895_v20, 23 }
 0x130   :  { %v648_v13 = vclz %v1046_v40  ;;  %v507_v62 = vor.u32 %v506_v35, %v505_v31  ;;  %vm509_vm12 = vcmp.lt.s32.totalorder %v489_v59, 2  ;;  %vm510_vm13 = vcmp.lt.s32.totalorder %v489_v59, 3 }
 0x131   :  { %vm511_vm14 = vcmp.lt.s32.totalorder %v489_v59, 4  ;;  %v516_v14 = vsel %vm508_vm10, %v495_v4, %v498_v7  ;;  %v512_v32 = vsel %vm508_vm10, %v492_v51, %v495_v4  ;;  %v520_v21 = vsel %vm508_vm10, %v498_v7, %v501_v49 }
 0x132   :  { %v1047_v63 = vadd.s32 4294967294, %v648_v13  ;;  %v513_v15 = vsel %vm511_vm14, %v501_v49, 2102212464  ;;  %v517_v17 = vsel %vm511_vm14, %v504_v9, 920167782  ;;  %vm582_vm0 = vcmp.lt.s32.totalorder %v1295_v42, 0 }
 0x133   :  { %v518_v19 = vsel %vm510_vm13, %v501_v49, %v517_v17  ;;  %v521_v55 = vsel %vm511_vm14, %v507_v62, 1326507024  ;;  %v514_v22 = vsel %vm510_vm13, %v498_v7, %v513_v15  ;;  %v636_v28 = vadd.s32 %v1545_v44, %v1552_v33 }
 0x134   :  { %vm1048_vm15 = vcmp.lt.s32.totalorder %v1047_v63, 0  ;;  %v519_v38 = vsel %vm509_vm12, %v516_v14, %v518_v19  ;;  %v522_v23 = vsel %vm510_vm13, %v504_v9, %v521_v55  ;;  %v892_v39 = vand.u32 2147483647, %v1574_v11 }
 0x135   :  { %v651_v25 = vsel %vm1048_vm15, 0, %v1047_v63  ;;  %v523_v26 = vsel %vm509_vm12, %v520_v21, %v522_v23  ;;  %v1607_v8 = vmul.u32.u64.low %v524_v10, %v519_v38  ;;  %v1608_v27 = vmul.u32.u64.high %v524_v10, %v519_v38, %v1607_v8 }
 0x136   :  { %v652_v30 = vsub.s32 32, %v651_v25  ;;  %v656_v37 = vsub.s32 4294967266, %v651_v25  ;;  %v1614_v46 = vmul.u32.u64.low %v524_v10, %v523_v26  ;;  %v1615_v41 = vmul.u32.u64.high %v524_v10, %v523_v26, %v1614_v46 }
 0x137   :  { %v1057_v60 = vadd.s32 4294967169, %v896_v57  ;;  %v653_v53 = vshll.u32 %v1585_v47, %v651_v25  ;;  %v515_v3 = vsel %vm509_vm12, %v512_v32, %v514_v22  ;;  %vm259_vm1 = vcmp.lt.s32.totalorder %v1582_v36, 2  ;;  %v135_v57 = vpop.f32.mrf.mxu0 }
 0x138   :  { %v654_v20 = vshrl.u32 %v636_v28, %v652_v30  ;;  %v657_v16 = vadd.s32 127, %v656_v37  ;;  %v666_v61 = vsub.s32 4, %v1576_v34  ;;  %v534_v44 = vadd.s32 1, %v1608_v27 }
 0x139   :  { %v902_v33 = vadd.s32 1, %v1057_v60  ;;  %vm260_vm2 = vcmp.eq.s32.totalorder %v1582_v36, 0  ;;  %vm263_vm3 = vcmp.eq.s32.totalorder %v1582_v36, 2  ;;  %v531_v4 = vmul.u32 %v524_v10, %v515_v3 }
 0x13a   :  { %v1151_v43 = vpop.eup %1150  ;;  %v655_v0 = vor.u32 %v654_v20, %v653_v53  ;;  %v658_v50 = vshll.u32 %v657_v16, 23  ;;  %vm533_vm4 = vc.u32 %v1615_v41, %v1607_v8  ;;  %v899_v40 = vand.u32 8388607, %v892_v39 }
 0x13b   :  { %v1153_v2 = vpop.eup %1152  ;;  %v264_v47 = vxor.u32 2147483648, %v1151_v43  ;;  %vm903_vm5 = vcmp.gt.s32.totalorder %v902_v33, 0  ;;  %v535_v5 = vsel %vm533_vm4, %v534_v44, %v1608_v27  ;;  %v667_v49 = vsel %vm582_vm0, %v666_v61, %v1576_v34 }
 0x13c   :  { %v261_v59 = vxor.u32 2147483648, %v1153_v2  ;;  %v659_v18 = vor.u32 4788187, %v658_v50  ;;  %v536_v9 = vadd.s32 %v535_v5, %v531_v4  ;;  %v904_v31 = vsel %vm903_vm5, %v902_v33, 0 }
 0x13d   :  { %v265_v7 = vsel %vm263_vm3, %v264_v47, %v1153_v2  ;;  %v662_v13 = vcvt.s32.f32 %v655_v0  ;;  %v906_v51 = vand.u32 31, %v904_v31  ;;  %vm256_vm6 = vweird.f32 %v1288_v24 }
 0x13e   :  { %v262_v35 = vsel %vm260_vm2, %v1151_v43, %v261_v59  ;;  %v660_v10 = vand.u32 2147483647, %v659_v18  ;;  %vm1640_vm7 = vcmp.le.f32.partialorder %v580_v45, 0.7853982  ;;  %v537_v34 = vadd.s32 536870912, %v536_v9 }
 0x13f   :  { %v266_v62 = vsel %vm259_vm1, %v262_v35, %v265_v7  ;;  %v669_v17 = vsel %vm1640_vm7, 0, %v667_v49  ;;  %v907_v32 = vsub.s32 32, %v906_v51  ;;  %v900_v24 = vor.u32 8388608, %v899_v40 }
 0x140   :  { %v267_v15 = vsel %vm256_vm6, nan, %v266_v62  ;;  %v663_v14 = vmul.f32 %v662_v13, %v660_v10  ;;  %v1646_v19 = vshrl.u32 %v537_v34, 30  ;;  %v909_v36 = vshll.u32 %v1197_v48, %v906_v51 }
 0x141   :  { %996 = vst [vmem:[#allocation2] sm:$0xff] %v267_v15  ;;  %v1650_v21 = vadd.f32 %v1273_v12, %v135_v57  ;;  %v910_v55 = vshrl.u32 %v1198_v52, %v907_v32  ;;  %v912_v22 = vshll.u32 %v1198_v52, %v906_v51  ;;  %v913_v38 = vshrl.u32 %v1199_v54, %v907_v32 }
 0x142   :  { %v664_v45 = vxor.u32 2147483648, %v663_v14  ;;  %v539_v23 = vshll.u32 %v1646_v19, 30  ;;  %v915_v25 = vshll.u32 %v1199_v54, %v906_v51  ;;  %v916_v26 = vshrl.u32 %v1200_v56, %v907_v32 }
 0x143   :  { %v919_v27 = vshrl.u32 %v1201_v58, %v907_v32  ;;  %v905_v12 = vshrl.u32 %v904_v31, 5  ;;  %v911_v30 = vor.u32 %v910_v55, %v909_v36  ;;  %v918_v37 = vshll.u32 %v1200_v56, %v906_v51 }
 0x144   :  { %v665_v28 = vsel %vm582_vm0, %v664_v45, %v663_v14  ;;  %v1665_v60 = vsub.s32 %v536_v9, %v539_v23  ;;  %v914_v53 = vor.u32 %v913_v38, %v912_v22  ;;  %v917_v20 = vor.u32 %v916_v26, %v915_v25 }
 0x145   :  { %v668_v46 = vsel %vm1640_vm7, %v1295_v42, %v665_v28  ;;  %v920_v16 = vor.u32 %v919_v27, %v918_v37  ;;  %v921_v3 = vshll.u32 %v1201_v58, %v906_v51  ;;  %v922_v61 = vshrl.u32 %v1202_v1, %v907_v32 }
 0x146   :  { %1154 = vcosq.f32 %v668_v46  ;;  %v542_v44 = vsub.s32 0, %v1665_v60  ;;  %v673_v33 = vadd.s32 3, %v669_v17  ;;  %vm927_vm8 = vcmp.lt.s32.totalorder %v905_v12, 4 }
 0x147   :  { %1156 = vsinq.f32 %v668_v46  ;;  %v923_v43 = vor.u32 %v922_v61, %v921_v3  ;;  %v375_v0 = vand.u32 2139095040, %v1650_v21  ;;  %v908_v2 = vshrl.u32 %v1197_v48, %v907_v32 }
 0x148   :  { %v1042_v50 = vmin.u32 %v542_v44, %v1665_v60  ;;  %vm924_vm9 = vcmp.lt.s32.totalorder %v905_v12, 1  ;;  %v929_v47 = vsel %vm927_vm8, %v917_v20, 2102212464  ;;  %vm925_vm11 = vcmp.lt.s32.totalorder %v905_v12, 2 }
 0x149   :  { %v932_v4 = vsel %vm924_vm9, %v911_v30, %v914_v53  ;;  %v933_v59 = vsel %vm927_vm8, %v920_v16, 920167782  ;;  %v940_v18 = vshll.u32 %v900_v24, 8  ;;  %vm926_vm10 = vcmp.lt.s32.totalorder %v905_v12, 3 }
 0x14a   :  { %v544_v5 = vclz %v1042_v50  ;;  %v928_v40 = vsel %vm924_vm9, %v908_v2, %v911_v30  ;;  %v936_v7 = vsel %vm924_vm9, %v914_v53, %v917_v20  ;;  %v930_v49 = vsel %vm926_vm10, %v914_v53, %v929_v47  ;;  %v155_v30 = vpop.f32.mrf.mxu1 }
 0x14b   :  { %v934_v9 = vsel %vm926_vm10, %v917_v20, %v933_v59  ;;  %v937_v31 = vsel %vm927_vm8, %v923_v43, 1326507024  ;;  %v376_v35 = vshrl.u32 %v375_v0, 23  ;;  %v674_v10 = vand.u32 3, %v673_v33  ;;  %v1174_v33 = vld [vmem:[%s1822_s2] ss:$0 sm:$0xff] }
 0x14c   :  { %v1043_v13 = vadd.s32 4294967294, %v544_v5  ;;  %v935_v51 = vsel %vm925_vm11, %v932_v4, %v934_v9  ;;  %v938_v57 = vsel %vm926_vm10, %v920_v16, %v937_v31  ;;  %v931_v14 = vsel %vm925_vm11, %v928_v40, %v930_v49  ;;  %s1203_s2 = smov [#allocation2]  }
 0x14d   :  { %v939_v62 = vsel %vm925_vm11, %v936_v7, %v938_v57  ;;  %v1678_v63 = vmul.u32.u64.low %v940_v18, %v935_v51  ;;  %v1679_v34 = vmul.u32.u64.high %v940_v18, %v935_v51, %v1678_v63  ;;  %v1037_v15 = vadd.s32 4294967169, %v376_v35  ;;  %s1009_s11 = sshll.u32 %s1203_s2, 4  ;;  %s1010_s11 = int_to_ptr.vmem [resolvable:$true] %s1009_s11 }
 0x14e   :  { %vm1044_vm12 = vcmp.lt.s32.totalorder %v1043_v13, 0  ;;  %v1683_v17 = vmul.u32.u64.low %v940_v18, %v939_v62  ;;  %v1684_v32 = vmul.u32.u64.high %v940_v18, %v939_v62, %v1683_v17  ;;  %v372_v36 = vand.u32 2147483647, %v1650_v21  ;;  %s1175_s12 = scalar_lea.vmem %s1010_s11, 1024  ;;  %p1180_p1 = scmp.lt.s32.totalorder %s1010_s11, %s1010_s11 }
 0x14f   :  { %v547_v24 = vsel %vm1044_vm12, 0, %v1043_v13  ;;  %v382_v45 = vadd.s32 1, %v1037_v15  ;;  %vm672_vm13 = vweird.f32 %v1295_v42  ;;  %v532_v55 = vadd.s32 %v1607_v8, %v1615_v41  ;;  %p1176_p0 = scmp.ne.s32.totalorder %s1010_s11, %s1175_s12  ;;  %p1181_p2 = scmp.lt.s32.totalorder %s1175_s12, %s1175_s12 }
 0x150   :  { %v548_v22 = vsub.s32 32, %v547_v24  ;;  %v552_v38 = vsub.s32 4294967266, %v547_v24  ;;  %vm679_vm14 = vcmp.eq.s32.totalorder %v674_v10, 2  ;;  %v947_v23 = vmul.u32 %v940_v18, %v931_v14 }
 0x151   :  { %v950_v25 = vadd.s32 1, %v1679_v34  ;;  %vm383_vm15 = vcmp.gt.s32.totalorder %v382_v45, 0  ;;  %v549_v27 = vshll.u32 %v1665_v60, %v547_v24  ;;  %vm949_vm0 = vc.u32 %v1684_v32, %v1678_v63  ;;  %p1182_p3 = por %p1181_p2, %p1180_p1 }
 0x152   :  { %v550_v28 = vshrl.u32 %v532_v55, %v548_v22  ;;  %v553_v12 = vadd.s32 127, %v552_v38  ;;  %v379_v41 = vand.u32 8388607, %v372_v36  ;;  %v384_v53 = vsel %vm383_vm15, %v382_v45, 0 }
 0x153   :  { %v1155_v26 = vpop.eup %1154  ;;  %v951_v8 = vsel %vm949_vm0, %v950_v25, %v1679_v34  ;;  %vm676_vm1 = vcmp.eq.s32.totalorder %v674_v10, 0  ;;  %vm478_vm2 = vcmp.lt.s32.totalorder %v1479_v29, 0  ;;  %v386_v44 = vand.u32 31, %v384_v53  ;;  %p1183_p4 = pnand %p1182_p3, %p1176_p0 }
 0x154   :  { %v1157_v37 = vpop.eup %1156  ;;  %v680_v46 = vxor.u32 2147483648, %v1155_v26  ;;  %v551_v16 = vor.u32 %v550_v28, %v549_v27  ;;  %v554_v3 = vshll.u32 %v553_v12, 23  ;;  %v952_v61 = vadd.s32 %v951_v8, %v947_v23 }
 0x155   :  { %v677_v20 = vxor.u32 2147483648, %v1157_v37  ;;  %v1702_v43 = vadd.f32 %v1174_v33, %v155_v30  ;;  %vm675_vm3 = vcmp.lt.s32.totalorder %v674_v10, 2  ;;  %vm1706_vm4 = vcmp.le.f32.partialorder %v476_v6, 0.7853982 }
 0x156   :  { %v681_v60 = vsel %vm679_vm14, %v680_v46, %v1157_v37  ;;  %v555_v2 = vor.u32 4788187, %v554_v3  ;;  %v953_v47 = vadd.s32 536870912, %v952_v61  ;;  %v562_v59 = vsub.s32 4, %v1646_v19 }
 0x157   :  { %v678_v0 = vsel %vm676_vm1, %v1155_v26, %v677_v20  ;;  %v380_v18 = vor.u32 8388608, %v379_v41  ;;  %v387_v5 = vsub.s32 32, %v386_v44  ;;  %v558_v49 = vcvt.s32.f32 %v551_v16 }
 0x158   :  { %v682_v4 = vsel %vm675_vm3, %v678_v0, %v681_v60  ;;  %v556_v7 = vand.u32 2147483647, %v555_v2  ;;  %v1713_v9 = vshrl.u32 %v953_v47, 30  ;;  %v791_v10 = vand.u32 2139095040, %v1702_v43 }
 0x159   :  { %v683_v40 = vsel %vm672_vm13, nan, %v682_v4  ;;  %v390_v6 = vshrl.u32 %v1198_v52, %v387_v5  ;;  %v393_v31 = vshrl.u32 %v1199_v54, %v387_v5  ;;  %v396_v35 = vshrl.u32 %v1200_v56, %v387_v5 }
 0x15a   :  { %1000 = vst [vmem:[#allocation2 + $0x20] sm:$0xff] %v683_v40  ;;  %v559_v13 = vmul.f32 %v558_v49, %v556_v7  ;;  %v955_v51 = vshll.u32 %v1713_v9, 30  ;;  %v389_v57 = vshll.u32 %v1197_v48, %v386_v44  ;;  %v392_v42 = vshll.u32 %v1198_v52, %v386_v44 }
 0x15b   :  { %v385_v62 = vshrl.u32 %v384_v53, 5  ;;  %v395_v34 = vshll.u32 %v1199_v54, %v386_v44  ;;  %v398_v15 = vshll.u32 %v1200_v56, %v386_v44  ;;  %v399_v14 = vshrl.u32 %v1201_v58, %v387_v5 }
 0x15c   :  { %v560_v17 = vxor.u32 2147483648, %v559_v13  ;;  %v956_v24 = vsub.s32 %v952_v61, %v955_v51  ;;  %v391_v45 = vor.u32 %v390_v6, %v389_v57  ;;  %v394_v55 = vor.u32 %v393_v31, %v392_v42 }
 0x15d   :  { %v397_v22 = vor.u32 %v396_v35, %v395_v34  ;;  %v400_v38 = vor.u32 %v399_v14, %v398_v15  ;;  %v401_v23 = vshll.u32 %v1201_v58, %v386_v44  ;;  %v402_v25 = vshrl.u32 %v1202_v1, %v387_v5 }
 0x15e   :  { %v561_v26 = vsel %vm478_vm2, %v560_v17, %v559_v13  ;;  %v563_v27 = vsel %vm478_vm2, %v562_v59, %v1646_v19  ;;  %v958_v28 = vsub.s32 0, %v956_v24  ;;  %v420_v12 = vshll.u32 %v380_v18, 8 }
 0x15f   :  { %v564_v30 = vsel %vm1706_vm4, %v1479_v29, %v561_v26  ;;  %v388_v37 = vshrl.u32 %v1197_v48, %v387_v5  ;;  %v403_v46 = vor.u32 %v402_v25, %v401_v23  ;;  %v792_v8 = vshrl.u32 %v791_v10, 23 }
 0x160   :  { %1158 = vcosq.f32 %v564_v30  ;;  %v1058_v41 = vmin.u32 %v958_v28, %v956_v24  ;;  %vm404_vm5 = vcmp.lt.s32.totalorder %v385_v62, 1  ;;  %vm407_vm6 = vcmp.lt.s32.totalorder %v385_v62, 4 }
 0x161   :  { %1160 = vsinq.f32 %v564_v30  ;;  %v409_v53 = vsel %vm407_vm6, %v397_v22, 2102212464  ;;  %v412_v20 = vsel %vm404_vm5, %v391_v45, %v394_v55  ;;  %v413_v16 = vsel %vm407_vm6, %v400_v38, 920167782 }
 0x162   :  { %v960_v3 = vclz %v1058_v41  ;;  %vm405_vm7 = vcmp.lt.s32.totalorder %v385_v62, 2  ;;  %vm406_vm8 = vcmp.lt.s32.totalorder %v385_v62, 3  ;;  %v408_v19 = vsel %vm404_vm5, %v388_v37, %v391_v45 }
 0x163   :  { %v410_v61 = vsel %vm406_vm8, %v394_v55, %v409_v53  ;;  %v414_v60 = vsel %vm406_vm8, %v397_v22, %v413_v16  ;;  %v416_v44 = vsel %vm404_vm5, %v394_v55, %v397_v22  ;;  %v417_v33 = vsel %vm407_vm6, %v403_v46, 1326507024 }
 0x164   :  { %v565_v0 = vsel %vm1706_vm4, 0, %v563_v27  ;;  %v1059_v2 = vadd.s32 4294967294, %v960_v3  ;;  %v415_v47 = vsel %vm405_vm7, %v412_v20, %v414_v60  ;;  %v418_v4 = vsel %vm406_vm8, %v400_v38, %v417_v33 }
 0x165   :  { %v411_v59 = vsel %vm405_vm7, %v408_v19, %v410_v61  ;;  %v419_v18 = vsel %vm405_vm7, %v416_v44, %v418_v4  ;;  %v1738_v5 = vmul.u32.u64.low %v420_v12, %v415_v47  ;;  %v1739_v40 = vmul.u32.u64.high %v420_v12, %v415_v47, %v1738_v5 }
 0x166   :  { %vm1060_vm9 = vcmp.lt.s32.totalorder %v1059_v2, 0  ;;  %v1742_v7 = vmul.u32.u64.low %v420_v12, %v419_v18  ;;  %v1743_v49 = vmul.u32.u64.high %v420_v12, %v419_v18, %v1742_v7  ;;  %v1053_v6 = vadd.s32 4294967169, %v792_v8 }
 0x167   :  { %v569_v31 = vadd.s32 3, %v565_v0  ;;  %v963_v35 = vsel %vm1060_vm9, 0, %v1059_v2  ;;  %v948_v50 = vadd.s32 %v1678_v63, %v1684_v32  ;;  %v427_v57 = vmul.u32 %v420_v12, %v411_v59 }
 0x168   :  { %v964_v10 = vsub.s32 32, %v963_v35  ;;  %v968_v13 = vsub.s32 4294967266, %v963_v35  ;;  %v798_v51 = vadd.s32 1, %v1053_v6  ;;  %v430_v42 = vadd.s32 1, %v1739_v40 }
 0x169   :  { %v788_v62 = vand.u32 2147483647, %v1702_v43  ;;  %v965_v34 = vshll.u32 %v956_v24, %v963_v35  ;;  %vm429_vm11 = vc.u32 %v1743_v49, %v1738_v5  ;;  %v570_v17 = vand.u32 3, %v569_v31 }
 0x16a   :  { %v966_v15 = vshrl.u32 %v948_v50, %v964_v10  ;;  %v969_v14 = vadd.s32 127, %v968_v13  ;;  %v431_v45 = vsel %vm429_vm11, %v430_v42, %v1739_v40  ;;  %vm799_vm10 = vcmp.gt.s32.totalorder %v798_v51, 0 }
 0x16b   :  { %v432_v32 = vadd.s32 %v431_v45, %v427_v57  ;;  %v800_v22 = vsel %vm799_vm10, %v798_v51, 0  ;;  %vm568_vm12 = vweird.f32 %v1479_v29  ;;  %vm894_vm13 = vcmp.lt.s32.totalorder %v1574_v11, 0 }
 0x16c   :  { %v967_v55 = vor.u32 %v966_v15, %v965_v34  ;;  %v970_v63 = vshll.u32 %v969_v14, 23  ;;  %v978_v24 = vsub.s32 4, %v1713_v9  ;;  %v802_v23 = vand.u32 31, %v800_v22 }
 0x16d   :  { %v1159_v38 = vpop.eup %1158  ;;  %vm1757_vm14 = vcmp.le.f32.partialorder %v892_v39, 0.7853982  ;;  %v433_v12 = vadd.s32 536870912, %v432_v32  ;;  %v795_v30 = vand.u32 8388607, %v788_v62  ;;  %vm572_vm15 = vcmp.eq.s32.totalorder %v570_v17, 0 }
 0x16e   :  { %v1161_v25 = vpop.eup %1160  ;;  %v576_v26 = vxor.u32 2147483648, %v1159_v38  ;;  %v971_v28 = vor.u32 4788187, %v970_v63  ;;  %vm575_vm0 = vcmp.eq.s32.totalorder %v570_v17, 2  ;;  %v803_v46 = vsub.s32 32, %v802_v23 }
 0x16f   :  { %v573_v37 = vxor.u32 2147483648, %v1161_v25  ;;  %v974_v53 = vcvt.s32.f32 %v967_v55  ;;  %v1763_v20 = vshrl.u32 %v433_v12, 30  ;;  %vm571_vm1 = vcmp.lt.s32.totalorder %v570_v17, 2 }
 0x170   :  { %v577_v8 = vsel %vm575_vm0, %v576_v26, %v1161_v25  ;;  %v972_v41 = vand.u32 2147483647, %v971_v28  ;;  %v979_v39 = vsel %vm894_vm13, %v978_v24, %v1713_v9  ;;  %v806_v3 = vshrl.u32 %v1198_v52, %v803_v46 }
 0x171   :  { %v574_v16 = vsel %vm572_vm15, %v1159_v38, %v573_v37  ;;  %v435_v60 = vshll.u32 %v1763_v20, 30  ;;  %v796_v44 = vor.u32 8388608, %v795_v30  ;;  %v805_v0 = vshll.u32 %v1197_v48, %v802_v23 }
 0x172   :  { %v578_v19 = vsel %vm571_vm1, %v574_v16, %v577_v8  ;;  %v975_v61 = vmul.f32 %v974_v53, %v972_v41  ;;  %v809_v2 = vshrl.u32 %v1199_v54, %v803_v46  ;;  %v812_v47 = vshrl.u32 %v1200_v56, %v803_v46 }
 0x173   :  { %v579_v33 = vsel %vm568_vm12, nan, %v578_v19  ;;  %v436_v59 = vsub.s32 %v432_v32, %v435_v60  ;;  %v801_v9 = vshrl.u32 %v800_v22, 5  ;;  %v808_v18 = vshll.u32 %v1198_v52, %v802_v23 }
 0x174   :  { %999 = vst [vmem:[#allocation2 + $0x18] sm:$0xff] %v579_v33  ;;  %v976_v4 = vxor.u32 2147483648, %v975_v61  ;;  %v807_v40 = vor.u32 %v806_v3, %v805_v0  ;;  %v811_v7 = vshll.u32 %v1199_v54, %v802_v23  ;;  %v814_v6 = vshll.u32 %v1200_v56, %v802_v23 }
 0x175   :  { %v815_v29 = vshrl.u32 %v1201_v58, %v803_v46  ;;  %v438_v35 = vsub.s32 0, %v436_v59  ;;  %v817_v50 = vshll.u32 %v1201_v58, %v802_v23  ;;  %v818_v10 = vshrl.u32 %v1202_v1, %v803_v46 }
 0x176   :  { %v977_v31 = vsel %vm894_vm13, %v976_v4, %v975_v61  ;;  %v810_v52 = vor.u32 %v809_v2, %v808_v18  ;;  %v813_v51 = vor.u32 %v812_v47, %v811_v7  ;;  %v981_v42 = vsel %vm1757_vm14, 0, %v979_v39 }
 0x177   :  { %v980_v13 = vsel %vm1757_vm14, %v1574_v11, %v977_v31  ;;  %v816_v57 = vor.u32 %v815_v29, %v814_v6  ;;  %v1038_v54 = vmin.u32 %v438_v35, %v436_v59  ;;  %v819_v56 = vor.u32 %v818_v10, %v817_v50 }
 0x178   :  { %1162 = vcosq.f32 %v980_v13  ;;  %v804_v34 = vshrl.u32 %v1197_v48, %v803_v46  ;;  %v836_v15 = vshll.u32 %v796_v44, 8  ;;  %vm820_vm2 = vcmp.lt.s32.totalorder %v801_v9, 1 }
 0x179   :  { %1164 = vsinq.f32 %v980_v13  ;;  %v440_v58 = vclz %v1038_v54  ;;  %vm822_vm3 = vcmp.lt.s32.totalorder %v801_v9, 3  ;;  %vm823_vm4 = vcmp.lt.s32.totalorder %v801_v9, 4 }
 0x17a   :  { %v825_v1 = vsel %vm823_vm4, %v813_v51, 2102212464  ;;  %v828_v14 = vsel %vm820_vm2, %v807_v40, %v810_v52  ;;  %v829_v17 = vsel %vm823_vm4, %v816_v57, 920167782  ;;  %v832_v45 = vsel %vm820_vm2, %v810_v52, %v813_v51 }
 0x17b   :  { %v1039_v55 = vadd.s32 4294967294, %v440_v58  ;;  %vm821_vm5 = vcmp.lt.s32.totalorder %v801_v9, 2  ;;  %v830_v63 = vsel %vm822_vm3, %v813_v51, %v829_v17  ;;  %v833_v32 = vsel %vm823_vm4, %v819_v56, 1326507024 }
 0x17c   :  { %v824_v22 = vsel %vm820_vm2, %v804_v34, %v807_v40  ;;  %v826_v38 = vsel %vm822_vm3, %v810_v52, %v825_v1  ;;  %v831_v24 = vsel %vm821_vm5, %v828_v14, %v830_v63  ;;  %v834_v23 = vsel %vm822_vm3, %v816_v57, %v833_v32 }
 0x17d   :  { %vm1040_vm6 = vcmp.lt.s32.totalorder %v1039_v55, 0  ;;  %v835_v48 = vsel %vm821_vm5, %v832_v45, %v834_v23  ;;  %v1791_v25 = vmul.u32.u64.low %v836_v15, %v831_v24  ;;  %v1792_v26 = vmul.u32.u64.high %v836_v15, %v831_v24, %v1791_v25 }
 0x17e   :  { %v985_v27 = vadd.s32 3, %v981_v42  ;;  %v443_v28 = vsel %vm1040_vm6, 0, %v1039_v55  ;;  %v1794_v12 = vmul.u32.u64.low %v836_v15, %v835_v48  ;;  %v1795_v30 = vmul.u32.u64.high %v836_v15, %v835_v48, %v1794_v12 }
 0x17f   :  { %v428_v37 = vadd.s32 %v1738_v5, %v1743_v49  ;;  %v444_v46 = vsub.s32 32, %v443_v28  ;;  %v448_v8 = vsub.s32 4294967266, %v443_v28  ;;  %v827_v41 = vsel %vm821_vm5, %v824_v22, %v826_v38 }
 0x180   :  { %v445_v53 = vshll.u32 %v436_v59, %v443_v28  ;;  %v846_v3 = vadd.s32 1, %v1792_v26  ;;  %v986_v19 = vand.u32 3, %v985_v27  ;;  %v843_v61 = vmul.u32 %v836_v15, %v827_v41 }
 0x181   :  { %v446_v16 = vshrl.u32 %v428_v37, %v444_v46  ;;  %v449_v39 = vadd.s32 127, %v448_v8  ;;  %vm845_vm7 = vc.u32 %v1795_v30, %v1791_v25  ;;  %vm984_vm10 = vweird.f32 %v1574_v11 }
 0x182   :  { %v847_v33 = vsel %vm845_vm7, %v846_v3, %v1792_v26  ;;  %vm991_vm8 = vcmp.eq.s32.totalorder %v986_v19, 2  ;;  %vm988_vm9 = vcmp.eq.s32.totalorder %v986_v19, 0  ;;  %vm987_vm11 = vcmp.lt.s32.totalorder %v986_v19, 2 }
 0x183   :  { %v447_v60 = vor.u32 %v446_v16, %v445_v53  ;;  %v450_v44 = vshll.u32 %v449_v39, 23  ;;  %v848_v2 = vadd.s32 %v847_v33, %v843_v61  ;;  %vm374_vm12 = vcmp.lt.s32.totalorder %v1650_v21, 0 }
 0x184   :  { %v458_v13 = vsub.s32 4, %v1763_v20  ;;  %vm373_vm13 = vcmp.le.f32.partialorder %v372_v36, 0.7853982  ;;  %v844_v14 = vadd.s32 %v1791_v25, %v1795_v30  ;;  %vm464_vm2 = vweird.f32 %v1650_v21 }
 0x185   :  { %v1163_v0 = vpop.eup %1162  ;;  %v451_v47 = vor.u32 4788187, %v450_v44  ;;  %v849_v59 = vadd.s32 536870912, %v848_v2  ;;  %v454_v40 = vcvt.s32.f32 %v447_v60  ;;  %vm790_vm3 = vcmp.lt.s32.totalorder %v1702_v43, 0 }
 0x186   :  { %v1165_v5 = vpop.eup %1164  ;;  %v992_v49 = vxor.u32 2147483648, %v1163_v0  ;;  %v459_v11 = vsel %vm374_vm12, %v458_v13, %v1763_v20  ;;  %vm789_vm4 = vcmp.le.f32.partialorder %v788_v62, 0.7853982 }
 0x187   :  { %v989_v4 = vxor.u32 2147483648, %v1165_v5  ;;  %v452_v18 = vand.u32 2147483647, %v451_v47  ;;  %v850_v6 = vshrl.u32 %v849_v59, 30  ;;  %v461_v34 = vsel %vm373_vm13, 0, %v459_v11 }
 0x188   :  { %v993_v9 = vsel %vm991_vm8, %v992_v49, %v1165_v5  ;;  %v465_v58 = vadd.s32 3, %v461_v34  ;;  %vm880_vm8 = vweird.f32 %v1702_v43 }
 0x189   :  { %v990_v7 = vsel %vm988_vm9, %v1163_v0, %v989_v4  ;;  %v455_v31 = vmul.f32 %v454_v40, %v452_v18  ;;  %v851_v50 = vshll.u32 %v850_v6, 30  ;;  %v874_v41 = vsub.s32 4, %v850_v6 }
 0x18a   :  { %v994_v29 = vsel %vm987_vm11, %v990_v7, %v993_v9  ;;  %v466_v36 = vand.u32 3, %v465_v58 }
 0x18b   :  { %v995_v35 = vsel %vm984_vm10, nan, %v994_v29  ;;  %v456_v10 = vxor.u32 2147483648, %v455_v31  ;;  %v852_v52 = vsub.s32 %v848_v2, %v851_v50  ;;  %v875_v39 = vsel %vm790_vm3, %v874_v41, %v850_v6 }
 0x18c   :  { %1003 = vst [vmem:[#allocation2 + $0x38] sm:$0xff] %v995_v35  ;;  %vm471_vm15 = vcmp.eq.s32.totalorder %v466_v36, 2  ;;  %vm468_vm0 = vcmp.eq.s32.totalorder %v466_v36, 0  ;;  %vm467_vm1 = vcmp.lt.s32.totalorder %v466_v36, 2  ;;  %v877_v3 = vsel %vm789_vm4, 0, %v875_v39 }
 0x18d   :  { %v457_v51 = vsel %vm374_vm12, %v456_v10, %v455_v31  ;;  %v854_v54 = vsub.s32 0, %v852_v52  ;;  %v881_v19 = vadd.s32 3, %v877_v3 }
 0x18e   :  { %v460_v57 = vsel %vm373_vm13, %v1650_v21, %v457_v51 }
 0x18f   :  { %1166 = vcosq.f32 %v460_v57  ;;  %v1054_v56 = vmin.u32 %v854_v54, %v852_v52  ;;  %v882_v21 = vand.u32 3, %v881_v19 }
 0x190   :  { %1168 = vsinq.f32 %v460_v57 }
 0x191   :  { %v856_v42 = vclz %v1054_v56  ;;  %vm887_vm5 = vcmp.eq.s32.totalorder %v882_v21, 2  ;;  %vm884_vm6 = vcmp.eq.s32.totalorder %v882_v21, 0  ;;  %vm883_vm7 = vcmp.lt.s32.totalorder %v882_v21, 2 }
 0x193   :  { %v1055_v15 = vadd.s32 4294967294, %v856_v42 }
 0x195   :  { %vm1056_vm14 = vcmp.lt.s32.totalorder %v1055_v15, 0 }
 0x196   :  { %v859_v1 = vsel %vm1056_vm14, 0, %v1055_v15 }
 0x197   :  { %v860_v17 = vsub.s32 32, %v859_v1  ;;  %v864_v45 = vsub.s32 4294967266, %v859_v1  ;;  %v861_v55 = vshll.u32 %v852_v52, %v859_v1 }
 0x199   :  { %v862_v63 = vshrl.u32 %v844_v14, %v860_v17  ;;  %v865_v32 = vadd.s32 127, %v864_v45 }
 0x19b   :  { %v863_v38 = vor.u32 %v862_v63, %v861_v55  ;;  %v866_v24 = vshll.u32 %v865_v32, 23 }
 0x19c   :  { %v1167_v22 = vpop.eup %1166 }
 0x19d   :  { %v1169_v20 = vpop.eup %1168  ;;  %v472_v23 = vxor.u32 2147483648, %v1167_v22  ;;  %v867_v26 = vor.u32 4788187, %v866_v24  ;;  %v870_v25 = vcvt.s32.f32 %v863_v38 }
 0x19e   :  { %v469_v48 = vxor.u32 2147483648, %v1169_v20 }
 0x19f   :  { %v473_v27 = vsel %vm471_vm15, %v472_v23, %v1169_v20  ;;  %v868_v12 = vand.u32 2147483647, %v867_v26 }
 0x1a0   :  { %v470_v28 = vsel %vm468_vm0, %v1167_v22, %v469_v48 }
 0x1a1   :  { %v474_v30 = vsel %vm467_vm1, %v470_v28, %v473_v27  ;;  %v871_v46 = vmul.f32 %v870_v25, %v868_v12 }
 0x1a2   :  { %v475_v37 = vsel %vm464_vm2, nan, %v474_v30 }
 0x1a3   :  { %998 = vst [vmem:[#allocation2 + $0x10] sm:$0xff] %v475_v37  ;;  %v872_v8 = vxor.u32 2147483648, %v871_v46 }
 0x1a5   :  { %v873_v53 = vsel %vm790_vm3, %v872_v8, %v871_v46 }
 0x1a6   :  { %v876_v16 = vsel %vm789_vm4, %v1702_v43, %v873_v53 }
 0x1a7   :  { %1170 = vcosq.f32 %v876_v16 }
 0x1a8   :  { %1172 = vsinq.f32 %v876_v16 }
 0x1b4   :  { %v1171_v61 = vpop.eup %1170 }
 0x1b5   :  { %v1173_v60 = vpop.eup %1172  ;;  %v888_v44 = vxor.u32 2147483648, %v1171_v61 }
 0x1b6   :  { %v885_v33 = vxor.u32 2147483648, %v1173_v60 }
 0x1b7   :  { %v889_v0 = vsel %vm887_vm5, %v888_v44, %v1173_v60 }
 0x1b8   :  { %v886_v62 = vsel %vm884_vm6, %v1171_v61, %v885_v33 }
 0x1b9   :  { %v890_v2 = vsel %vm883_vm7, %v886_v62, %v889_v0 }
 0x1ba   :  { %v891_v5 = vsel %vm880_vm8, nan, %v890_v2 }
 0x1bb   :  { %1002 = vst [vmem:[#allocation2 + $0x30] sm:$0xff] %v891_v5 }
 0x1bc   :  { %1186 = shalt.err (!%p1183_p4)
}
 0x1bd   :  { %s1204_s13 = smov 128   ;;  %s1205_s14 = smov 8  }
 0x1be   :  { %1015 = dma.vmem_to_hbm [thread:$0]  %s1010_s11, 1024, %s1823_s3, [#allocation3], %s1204_s13, %s1204_s13, %s1205_s14  }
 0x1bf   :  { %1195 = dma.done.wait [#allocation3], 1024  }
 0x1c0   :  { %1196 = vsyncadd [#allocation3], 4294966272 }
 0x1c1   :  { %1019 = vsyncpa [#allocation3], 1 }

</bundles_post_ra>
